<compile_context>
chip_gen: v5e
topology: v5e:2x2
jax: 0.10.0
libtpu: 0.0.40
codegen_flags: <defaults>
</compile_context>

<pallas_src>
import functools

import jax
import jax.numpy as jnp
from jax.experimental import pallas as pl
from jax.experimental.pallas import tpu as pltpu

LANE = 128
_TARGET_BLOCK_BYTES = 4 << 20   # ~4 MiB of data per grid step
_MIN_BLOCK_BYTES = 512 << 10    # never shrink a block below 512 KiB
_MIN_STEPS = 8                  # >= ~4 steps per TensorCore on v7x (2 TCs)


def _swish_kernel(x_ref, o_ref):
    # Compute in f32 regardless of input dtype: v5e has no bf16 VPU/EUP and
    # the kernel is HBM-bound, so the f32 VALU/EUP work is fully hidden.
    x = x_ref[...].astype(jnp.float32)
    # Exact sigmoid: exp on the (otherwise idle) EUP + exact divide on the VPU.
    sig = 1.0 / (1.0 + jnp.exp(-x))
    o_ref[...] = (x * sig).astype(o_ref.dtype)


def _round_up(a: int, b: int) -> int:
    return (a + b - 1) // b * b


def _sublane_multiple(dtype) -> int:
    # Native second-to-last-dim tile: 8 rows for 4-byte, 16 for 2-byte,
    # 32 for 1-byte dtypes (sub-32-bit packs along sublanes).
    return max(8, 32 // jnp.dtype(dtype).itemsize)


def _swish_2d(x2d: jax.Array, block_rows, donate_input: bool) -> jax.Array:
    rows = x2d.shape[0]
    dtype = x2d.dtype
    itemsize = jnp.dtype(dtype).itemsize
    sub = _sublane_multiple(dtype)

    # Dtype-scaled default block height targeting ~4 MiB per block.
    if block_rows is None:
        block_rows = max(sub, _TARGET_BLOCK_BYTES // (LANE * itemsize))
    block_rows = max(sub, _round_up(block_rows, sub))

    bm = min(block_rows, _round_up(rows, sub))

    # Keep >= _MIN_STEPS grid steps on large tensors so each of v7x's two
    # TensorCores gets several blocks (restores double-buffering overlap),
    # but never shrink a block below ~512 KiB.
    min_rows = max(sub, _MIN_BLOCK_BYTES // (LANE * itemsize))
    if rows >= _MIN_STEPS * min_rows and pl.cdiv(rows, bm) < _MIN_STEPS:
        bm = max(min_rows, _round_up(pl.cdiv(rows, _MIN_STEPS), sub))

    grid = (pl.cdiv(rows, bm),)

    # Double-buffered in + out VMEM footprint; raise the scoped limit only
    # when the big blocks actually need it (stays far below v7x's 64 MiB).
    block_bytes = bm * LANE * itemsize
    vmem_bytes = 2 * 2 * block_bytes
    compiler_params = pltpu.CompilerParams(
        dimension_semantics=("parallel",),
        vmem_limit_bytes=(vmem_bytes + (8 << 20)) if vmem_bytes > (12 << 20) else None,
    )

    n_elems = rows * LANE
    cost = pl.CostEstimate(
        flops=4 * n_elems,
        transcendentals=n_elems,
        bytes_accessed=2 * n_elems * itemsize,
    )

    return pl.pallas_call(
        _swish_kernel,
        out_shape=jax.ShapeDtypeStruct((rows, LANE), dtype),
        grid_spec=pltpu.PrefetchScalarGridSpec(
            num_scalar_prefetch=0,
            grid=grid,
            in_specs=[pl.BlockSpec((bm, LANE), lambda i: (i, 0))],
            out_specs=pl.BlockSpec((bm, LANE), lambda i: (i, 0)),
        ),
        compiler_params=compiler_params,
        cost_estimate=cost,
        # Donating the input halves peak HBM allocation when the caller can
        # actually donate; off by default so non-donated callers don't pay a
        # defensive copy.
        input_output_aliases={0: 0} if donate_input else {},
    )(x2d)


def _swish_jnp(x: jax.Array) -> jax.Array:
    xf = x.astype(jnp.float32)
    return (xf * (1.0 / (1.0 + jnp.exp(-xf)))).astype(x.dtype)


@functools.partial(jax.jit, static_argnames=("block_rows", "donate_input"))
def swish(x: jax.Array, *, block_rows=None, donate_input: bool = False) -> jax.Array:
    """Swish / SiLU: x * sigmoid(x). Any shape, any float dtype."""
    orig_shape = x.shape
    flat = x.reshape(-1)
    n = flat.shape[0]

    rem = n % LANE
    if rem == 0:
        # Common case (conv feature maps): zero-copy lane-dense view.
        out2d = _swish_2d(flat.reshape(n // LANE, LANE), block_rows, donate_input)
        return out2d.reshape(orig_shape)

    # Ragged tail: kernel on the 128-aligned bulk, tiny plain-jnp epilogue on
    # the <128-element remainder (no full-array pad / slice passes).
    n_bulk = n - rem
    if n_bulk == 0:
        return _swish_jnp(flat).reshape(orig_shape)
    bulk_out = _swish_2d(
        flat[:n_bulk].reshape(n_bulk // LANE, LANE), block_rows, donate_input
    ).reshape(-1)
    tail_out = _swish_jnp(flat[n_bulk:])
    return jnp.concatenate([bulk_out, tail_out]).reshape(orig_shape)


if __name__ == "__main__":
    key = jax.random.PRNGKey(0)
    # NCHW input, as a PyTorch conv feature map would be.
    x = jax.random.normal(key, (2, 4, 16, 16), dtype=jnp.float32)

    y = swish(x)
    y = jax.block_until_ready(y)

    # Reference check (plain JAX). Exact sigmoid in the kernel -> tight tol.
    y_ref = x * jax.nn.sigmoid(x)
    assert y.shape == x.shape and y.dtype == x.dtype
    assert jnp.allclose(y, y_ref, atol=1e-5, rtol=1e-5)

    print("KERNEL_OK")
</pallas_src>

<mosaic_0001>
module attributes {stable_mosaic.version = 11 : i64} {
  func.func @_swish_kernel(%arg0: i32, %arg1: memref<16x128xf32, #tpu.memory_space<vmem>>, %arg2: memref<16x128xf32, #tpu.memory_space<vmem>>) attributes {dimension_semantics = [#tpu.dimension_semantics<parallel>], iteration_bounds = array<i64: 1>, scalar_prefetch = 0 : i64, scratch_operands = 0 : i64, tpu.core_type = #tpu.core_type<tc>, window_params = [{transform_indices = @transform_0, window_bounds = array<i64: 16, 128>}, {transform_indices = @transform_1, window_bounds = array<i64: 16, 128>}]} {
    %c0 = arith.constant 0 : index
    %c0_0 = arith.constant 0 : index
    %0 = vector.load %arg1[%c0, %c0_0] : memref<16x128xf32, #tpu.memory_space<vmem>>, vector<16x128xf32>
    %cst = arith.constant 0.000000e+00 : f32
    %1 = vector.broadcast %cst : f32 to vector<16x128xf32>
    %2 = arith.subf %1, %0 : vector<16x128xf32>
    %3 = math.exp %2 : vector<16x128xf32>
    %cst_1 = arith.constant 1.000000e+00 : f32
    %4 = vector.broadcast %cst_1 : f32 to vector<16x128xf32>
    %5 = arith.addf %4, %3 : vector<16x128xf32>
    %cst_2 = arith.constant 1.000000e+00 : f32
    %6 = vector.broadcast %cst_2 : f32 to vector<16x128xf32>
    %7 = arith.divf %6, %5 : vector<16x128xf32>
    %8 = arith.mulf %0, %7 : vector<16x128xf32>
    %c0_3 = arith.constant 0 : index
    %c0_4 = arith.constant 0 : index
    %9 = vector.load %arg2[%c0_3, %c0_4] : memref<16x128xf32, #tpu.memory_space<vmem>>, vector<16x128xf32>
    tpu.vector_store %arg2[%c0_3, %c0_4], %8 {strides = array<i32>} : memref<16x128xf32, #tpu.memory_space<vmem>>, vector<16x128xf32>,
    return
  }
  func.func @transform_0(%arg0: i32) -> (i32, i32) {
    %c0_i32 = arith.constant 0 : i32
    %c0_i32_0 = arith.constant 0 : i32
    return %arg0, %c0_i32 : i32, i32
  }
  func.func @transform_1(%arg0: i32) -> (i32, i32) {
    %c0_i32 = arith.constant 0 : i32
    %c0_i32_0 = arith.constant 0 : i32
    return %arg0, %c0_i32 : i32, i32
  }
}

</mosaic_0001>

<bundles_post_ra>
// kernel: swish.1
= control target key start
LH: loop header
LB: loop body
LE: loop exit
PB: predicated region body
PF: predicated region fallthrough
CT: control target
= control target key end

     0   :  { %s86_s0 = inlined_call_operand.vmem [shape: f32[16,128], index: 0, kind: input, shape index: {}]   ;;  %s87_s1 = inlined_call_operand.vmem [shape: f32[16,128], index: 1, kind: output, shape index: {}]  }
   0x1   :  { %v8_v0 = vld [vmem:[%s86_s0] sm:$0xff]  ;;  %v9_v1 = vld [vmem:[%s86_s0 + $0x8] sm:$0xff] }
   0x2   :  { %v10_v2 = vsub.f32 0.0, %v8_v0  ;;  %v11_v3 = vsub.f32 0.0, %v9_v1 }
   0x4   :  { %v12_v4 = vmul.f32 1.442695, %v10_v2  ;;  %v14_v5 = vmul.f32 1.442695, %v11_v3 }
   0x6   :  { %56 = vpow2.f32 %v12_v4 }
   0x7   :  { %58 = vpow2.f32 %v14_v5 }
   0xc   :  { %v57_v6 = vpop.eup %56 }
   0xd   :  { %v59_v7 = vpop.eup %58  ;;  %v16_v8 = vadd.f32 1.0, %v57_v6 }
   0xe   :  { %v17_v9 = vadd.f32 1.0, %v59_v7 }
   0xf   :  { %60 = vrcp.f32 %v16_v8  ;;  %vm23_vm0 = vweird.f32 %v16_v8  ;;  %v29_v13 = vand.u32 2147483648, %v16_v8  ;;  %v27_v16 = vand.u32 2147483647, %v16_v8 }
  0x10   :  { %62 = vrcp.f32 %v17_v9  ;;  %v44_v17 = vand.u32 2147483648, %v17_v9  ;;  %vm38_vm2 = vweird.f32 %v17_v9  ;;  %v42_v19 = vand.u32 2147483647, %v17_v9 }
  0x11   :  { %v30_v21 = vor.u32 1.1754944e-38, %v29_v13  ;;  %vm28_vm5 = vcmp.eq.f32.partialorder %v27_v16, 8.507059e+37 }
  0x12   :  { %v45_v24 = vor.u32 1.1754944e-38, %v44_v17  ;;  %vm43_vm7 = vcmp.eq.f32.partialorder %v42_v19, 8.507059e+37 }
  0x15   :  { %v61_v10 = vpop.eup %60 }
  0x16   :  { %v63_v11 = vpop.eup %62  ;;  %v19_v12 = vmul.f32 %v61_v10, %v16_v8  ;;  %vm24_vm1 = vweird.f32 %v61_v10 }
  0x17   :  { %v34_v14 = vmul.f32 %v63_v11, %v17_v9  ;;  %vm39_vm3 = vweird.f32 %v63_v11  ;;  %vm25_vm4 = vmor %vm23_vm0, %vm24_vm1 }
  0x18   :  { %v20_v15 = vsub.f32 1.0, %v19_v12  ;;  %vm40_vm6 = vmor %vm38_vm2, %vm39_vm3 }
  0x19   :  { %v35_v18 = vsub.f32 1.0, %v34_v14 }
  0x1a   :  { %v21_v20 = vmul.f32 %v61_v10, %v20_v15 }
  0x1b   :  { %v36_v22 = vmul.f32 %v63_v11, %v35_v18 }
  0x1c   :  { %v22_v23 = vadd.f32 %v61_v10, %v21_v20 }
  0x1d   :  { %v37_v25 = vadd.f32 %v63_v11, %v36_v22 }
  0x1e   :  { %v26_v26 = vsel %vm25_vm4, %v61_v10, %v22_v23 }
  0x1f   :  { %v31_v27 = vsel %vm28_vm5, %v30_v21, %v26_v26  ;;  %v41_v28 = vsel %vm40_vm6, %v63_v11, %v37_v25 }
  0x20   :  { %v48_v29 = vmul.f32 %v31_v27, %v8_v0  ;;  %v46_v30 = vsel %vm43_vm7, %v45_v24, %v41_v28 }
  0x21   :  { %v49_v31 = vmul.f32 %v46_v30, %v9_v1 }
  0x22   :  { %50 = vst [vmem:[%s87_s1] sm:$0xff] %v48_v29 }
  0x23   :  { %51 = vst [vmem:[%s87_s1 + $0x8] sm:$0xff] %v49_v31 }

</bundles_post_ra>
